<compile_context>
chip_gen: v7x
topology: tpu7x:2x2x1
jax: 0.10.0
libtpu: 0.0.40
codegen_flags: <defaults>
</compile_context>

<pallas_src>
import functools

import jax
import jax.numpy as jnp
from jax.experimental import pallas as pl
from jax.experimental.pallas import tpu as pltpu


LEAKY_SLOPE = 0.1
ROW_TILE_VMEM_BUDGET = 8 * 1024 * 1024   # per-grid-step working set target (bytes)


def _round_up(a, b):
    return (a + b - 1) // b * b


@functools.lru_cache(maxsize=None)
def _vmem_limit_bytes():
    # Per-generation scoped-VMEM budget: ~3/4 of physical, capped.
    # v7x (64 MiB physical) -> 48 MiB; v5e/v6e (128 MiB) -> 96 MiB.
    try:
        cap = int(pltpu.get_tpu_info().vmem_capacity_bytes)
    except Exception:
        cap = 64 * 1024 * 1024            # conservative fallback
    return max(32 * 1024 * 1024, min(cap * 3 // 4, 96 * 1024 * 1024))


@functools.lru_cache(maxsize=None)
def _tap_dtype():
    # Depthwise tap multiplies in bf16 on chips with a bf16 VPU (v6e / v7x),
    # f32 on older generations (v5e and earlier have no bf16 VALU).
    try:
        kind = jax.devices()[0].device_kind.lower()
    except Exception:
        kind = ""
    old = any(t in kind for t in ("v2", "v3", "v4", "v5"))
    return jnp.float32 if old else jnp.bfloat16


# ----------------------------------------------------------------------------
# Pallas kernels
# ----------------------------------------------------------------------------
def _matmul_bias_act_kernel(x_ref, w_ref, b_ref, o_ref, *, slope):
    # x: (tm, K) bf16, w: (K, N) bf16, b: (1, N) f32 -> o: (tm, N) o_ref.dtype
    y = jnp.dot(x_ref[...], w_ref[...], preferred_element_type=jnp.float32)
    y = y + b_ref[...]
    y = jnp.where(y >= 0.0, y, slope * y)
    o_ref[...] = y.astype(o_ref.dtype)


def _dw_pw_kernel(x_ref, dww_ref, dwb_ref, pww_ref, pwb_ref, o_ref, *,
                  stride, Tr, Wq, slope, tap_dtype):
    # x:   (s*s, Tr+halo, Wq+halo, Cin) bf16 -- phase-decomposed, padded row tile
    # dww: (9, 1, 1, Cin) tap_dtype (BN1 scale folded in)
    # dwb: (1, 1, Cin)    f32
    # pww: (Cin, Cout)    bf16 (BN2 scale folded in)
    # pwb: (1, Cout)      f32
    # o:   (Tr*Wq, Cout)  bf16
    s = stride
    xb = x_ref[...]                      # single bf16 load; no whole-block upcast
    dww = dww_ref[...]

    # Depthwise 3x3: 9 shifted mul-adds.  Stride-2 taps read the 2x2 phase planes so
    # only the strided output is ever computed.  Accumulate in f32, init from tap 0.
    acc = None
    for kh in range(3):
        for kw in range(3):
            plane = (kh % s) * s + (kw % s)
            oh, ow = kh // s, kw // s
            t = xb[plane, oh:oh + Tr, ow:ow + Wq, :].astype(tap_dtype)
            t = (t * dww[kh * 3 + kw]).astype(jnp.float32)
            acc = t if acc is None else acc + t
    y = acc + dwb_ref[...]               # (Tr, Wq, Cin) f32
    y = jnp.where(y >= 0.0, y, slope * y)

    # Wq is a multiple of 8, so this flatten is layout-preserving (no relayout copy);
    # no VMEM scratch / per-row store loop needed.
    m = y.reshape(Tr * Wq, y.shape[-1]).astype(jnp.bfloat16)

    # Pointwise 1x1 conv on the MXU, fed straight from registers/VMEM.
    z = jnp.dot(m, pww_ref[...], preferred_element_type=jnp.float32)
    z = z + pwb_ref[...]
    z = jnp.where(z >= 0.0, z, slope * z)
    o_ref[...] = z.astype(o_ref.dtype)


def _avg_fc_kernel(x_ref, w_ref, b_ref, o_ref):
    # x: (H, W, C) bf16 (one image), w: (C, Nout) bf16, b: (1, Nout) f32
    xm = jnp.mean(x_ref[...].astype(jnp.float32), axis=0)        # (W, C)
    xm = jnp.mean(xm, axis=0, keepdims=True)                      # (1, C)
    y = jnp.dot(xm.astype(jnp.bfloat16), w_ref[...],
                preferred_element_type=jnp.float32)
    o_ref[...] = y + b_ref[...]


# ----------------------------------------------------------------------------
# Wrappers
# ----------------------------------------------------------------------------
def matmul_bias_act(x2d, w_bf16, bias, slope, vmem_limit,
                    out_dtype=jnp.float32, tm=2048):
    """(M, K) @ (K, N) + bias, LeakyReLU.  Grid over M tiles, bf16 MXU operands."""
    M, K = x2d.shape
    Kw, Nout = w_bf16.shape
    assert K == Kw
    x2d = x2d.astype(jnp.bfloat16)
    Mp = _round_up(M, 8)
    tm = min(tm, Mp)
    Mp = _round_up(Mp, tm)
    if Mp != M:
        x2d = jnp.pad(x2d, ((0, Mp - M), (0, 0)))
    out = pl.pallas_call(
        functools.partial(_matmul_bias_act_kernel, slope=slope),
        grid=(Mp // tm,),
        in_specs=[
            pl.BlockSpec((tm, K), lambda i: (i, 0)),
            pl.BlockSpec((K, Nout), lambda i: (0, 0)),
            pl.BlockSpec((1, Nout), lambda i: (0, 0)),
        ],
        out_specs=pl.BlockSpec((tm, Nout), lambda i: (i, 0)),
        out_shape=jax.ShapeDtypeStruct((Mp, Nout), out_dtype),
        compiler_params=pltpu.CompilerParams(
            dimension_semantics=("parallel",),
            vmem_limit_bytes=vmem_limit),
    )(x2d, w_bf16, bias.reshape(1, Nout).astype(jnp.float32))
    if Mp != M:
        out = out[:M]
    return out


def conv0_bn_act(x, w_bf16, bias, stride, slope, vmem_limit):
    """First standard 3x3 conv (pad=1) + folded BN + LeakyReLU.

    Wrapper-side im2col is only acceptable here because Cin=3 (9*Cin = 27 -> 32
    columns); the patch matrix is built directly in bf16.
    """
    N, H, W, C = x.shape
    Hout = (H - 1) // stride + 1
    Wout = (W - 1) // stride + 1
    Kpad = w_bf16.shape[0]
    xp = jnp.pad(x, ((0, 0), (1, 1), (1, 1), (0, 0)))
    pats = []
    for kh in range(3):
        for kw in range(3):
            pats.append(xp[:, kh:kh + (Hout - 1) * stride + 1:stride,
                              kw:kw + (Wout - 1) * stride + 1:stride, :])
    if Kpad > 9 * C:   # pad K 27 -> 32 with zero columns (matches zero weight rows)
        pats.append(jnp.zeros((N, Hout, Wout, Kpad - 9 * C), x.dtype))
    pat = jnp.concatenate(pats, axis=-1).reshape(N * Hout * Wout, Kpad)
    y = matmul_bias_act(pat, w_bf16, bias, slope, vmem_limit,
                        out_dtype=jnp.bfloat16)
    return y.reshape(N, Hout, Wout, -1)


def _pick_row_tile(Hout, Wq, Cin, Cout, s, halo, budget=ROW_TILE_VMEM_BUDGET):
    """Largest output-row tile whose (double-buffered tiles + f32 working set) fits."""
    lane_in = _round_up(max(Cin, 128), 128)
    lane_out = _round_up(max(Cout, 128), 128)

    def est(tr):
        x_blk = s * s * (tr + halo) * _round_up(Wq + halo, 16) * lane_in * 2
        o_blk = _round_up(tr * Wq, 16) * lane_out * 2
        work = tr * Wq * (lane_in + lane_out) * 4
        return 2 * (x_blk + o_blk) + work

    for cand in sorted({Hout, 128, 64, 32, 16, 8, 4, 2, 1}, reverse=True):
        if cand <= Hout and est(cand) <= budget:
            return cand
    return 1


def dw_pw_block(x, layer, slope, tap_dtype, vmem_limit):
    """Fused conv_dw block: depthwise 3x3 (+BN+act) -> pointwise 1x1 (+BN+act)."""
    N, H, W, Cin = x.shape
    s = layer['stride']
    Cout = layer['pw_w'].shape[1]
    Hout = (H - 1) // s + 1
    Wout = (W - 1) // s + 1
    halo = 2 // s                       # halo rows/cols in phase-plane coordinates
    Wq = _round_up(Wout, 8)             # kernel-side width (multiple of 8)

    Tr = _pick_row_tile(Hout, Wq, Cin, Cout, s, halo)
    T = -(-Hout // Tr)
    Tr = -(-Hout // T)                  # rebalance so padded-row waste < T rows
    Hq = T * Tr

    # Zero-pad so the conv's pad=1 border exists and the phase planes cover exactly
    # Hq x Wq output positions plus the halo (also handles odd H/W).
    Hp = s * Hq + 2
    Wp = s * Wq + 2
    xp = jnp.pad(x, ((0, 0), (1, Hp - H - 1), (1, Wp - W - 1), (0, 0)))

    if s == 1:
        ph = xp[:, None]                                       # (N, 1, Hq+2, Wq+2, C)
    else:
        # 2x2 phase decomposition: stride-2 conv with unit-stride in-kernel slices.
        planes = [xp[:, a::s, b::s, :] for a in range(s) for b in range(s)]
        ph = jnp.stack(planes, axis=1)                         # (N, 4, Hq+1, Wq+1, C)
    P, Rp, Wpp = ph.shape[1], ph.shape[2], ph.shape[3]
    Rin = Tr + halo

    # Overlapping row tiles (only the halo rows are duplicated by the wrapper; buys a
    # standard non-overlapping BlockSpec with plenty of parallel grid steps).
    if T == 1:
        pht = ph                                               # already (N, P, Rin, Wpp, C)
    else:
        tiles = [ph[:, :, t * Tr:t * Tr + Rin] for t in range(T)]
        pht = jnp.stack(tiles, axis=1).reshape(N * T, P, Rin, Wpp, Cin)

    kernel = functools.partial(_dw_pw_kernel, stride=s, Tr=Tr, Wq=Wq,
                               slope=slope, tap_dtype=tap_dtype)
    out = pl.pallas_call(
        kernel,
        grid=(N * T,),
        in_specs=[
            pl.BlockSpec((None, P, Rin, Wpp, Cin), lambda n: (n, 0, 0, 0, 0)),
            pl.BlockSpec((9, 1, 1, Cin), lambda n: (0, 0, 0, 0)),
            pl.BlockSpec((1, 1, Cin), lambda n: (0, 0, 0)),
            pl.BlockSpec((Cin, Cout), lambda n: (0, 0)),
            pl.BlockSpec((1, Cout), lambda n: (0, 0)),
        ],
        out_specs=pl.BlockSpec((None, Tr * Wq, Cout), lambda n: (n, 0, 0)),
        out_shape=jax.ShapeDtypeStruct((N * T, Tr * Wq, Cout), jnp.bfloat16),
        compiler_params=pltpu.CompilerParams(
            dimension_semantics=("parallel",),      # batch x row-tiles, all parallel
            vmem_limit_bytes=vmem_limit),
    )(pht, layer['dw_w'].astype(tap_dtype), layer['dw_b'],
      layer['pw_w'], layer['pw_b'])

    # Drop the alignment junk rows/cols (fuses with the next layer's pad in XLA).
    out = out.reshape(N, Hq, Wq, Cout)[:, :Hout, :Wout, :]
    return out


def avg_fc(x, fc_w_bf16, fc_b, vmem_limit):
    """AdaptiveAvgPool2d((1,1)) + view + Linear(256, 1000->1024), batch-gridded."""
    N, H, W, C = x.shape
    Nout = fc_w_bf16.shape[1]
    out = pl.pallas_call(
        _avg_fc_kernel,
        grid=(N,),
        in_specs=[
            pl.BlockSpec((None, H, W, C), lambda n: (n, 0, 0, 0)),
            pl.BlockSpec((C, Nout), lambda n: (0, 0)),
            pl.BlockSpec((1, Nout), lambda n: (0, 0)),
        ],
        out_specs=pl.BlockSpec((None, 1, Nout), lambda n: (n, 0, 0)),
        out_shape=jax.ShapeDtypeStruct((N, 1, Nout), jnp.float32),
        compiler_params=pltpu.CompilerParams(
            dimension_semantics=("parallel",),
            vmem_limit_bytes=vmem_limit),
    )(x, fc_w_bf16, fc_b.reshape(1, Nout).astype(jnp.float32))
    return out.reshape(N, Nout)


# ----------------------------------------------------------------------------
# Deterministic parameter initialization (synthetic, BN folded at init)
# ----------------------------------------------------------------------------
def _bn_fold(key, C):
    k1, k2, k3, k4 = jax.random.split(key, 4)
    gamma = 1.0 + 0.1 * jax.random.normal(k1, (C,), jnp.float32)
    beta = 0.1 * jax.random.normal(k2, (C,), jnp.float32)
    mean = 0.1 * jax.random.normal(k3, (C,), jnp.float32)
    var = jnp.abs(jax.random.normal(k4, (C,), jnp.float32)) + 0.5
    scale = gamma / jnp.sqrt(var + 1e-5)      # eval-mode BN -> scale/bias
    bias = beta - mean * scale
    return scale, bias


# conv_dw layer configs (inp, oup, stride) matching MobileNetV1.__init__
DW_CONFIG = [
    (8, 16, 1), (16, 32, 2), (32, 32, 1), (32, 64, 2), (64, 64, 1),   # stage1
    (64, 128, 2), (128, 128, 1), (128, 128, 1), (128, 128, 1),
    (128, 128, 1), (128, 128, 1),                                     # stage2
    (128, 256, 2), (256, 256, 1),                                     # stage3
]


def init_params(key):
    params = {}
    # conv_bn(3, 8, stride=2): fold BN scale into the (27 -> 32, 8) im2col weight.
    key, k1, k2 = jax.random.split(key, 3)
    w0 = 0.1 * jax.random.normal(k1, (3, 3, 3, 8), jnp.float32)
    s0, b0 = _bn_fold(k2, 8)
    w0 = (w0 * s0).reshape(27, 8)
    w0 = jnp.pad(w0, ((0, 32 - 27), (0, 0)))            # K: 27 -> 32 zero rows
    params['conv0_w'] = w0.astype(jnp.bfloat16)
    params['conv0_b'] = b0

    params['dw'] = []
    for (inp, oup, stride) in DW_CONFIG:
        key, k1, k2, k3, k4 = jax.random.split(key, 5)
        dw_w = 0.2 * jax.random.normal(k1, (3, 3, inp), jnp.float32)
        s1, b1 = _bn_fold(k2, inp)
        pw_w = (1.0 / jnp.sqrt(float(inp))) * jax.random.normal(
            k3, (inp, oup), jnp.float32)
        s2, b2 = _bn_fold(k4, oup)
        params['dw'].append({
            'stride': stride,
            'dw_w': (dw_w * s1).reshape(9, 1, 1, inp),           # f32, BN1 folded
            'dw_b': b1.reshape(1, 1, inp),
            'pw_w': (pw_w * s2[None, :]).astype(jnp.bfloat16),   # BN2 folded
            'pw_b': b2.reshape(1, oup),
        })

    # fc: Linear(256, 1000); pad the output dim to 1024 lanes (zeros), slice back.
    key, k1, k2 = jax.random.split(key, 3)
    fc_w = (1.0 / 16.0) * jax.random.normal(k1, (256, 1000), jnp.float32)
    fc_b = 0.1 * jax.random.normal(k2, (1000,), jnp.float32)
    params['fc_w'] = jnp.pad(fc_w, ((0, 0), (0, 24))).astype(jnp.bfloat16)
    params['fc_b'] = jnp.pad(fc_b, (0, 24))
    return params


# ----------------------------------------------------------------------------
# Forward pass
# ----------------------------------------------------------------------------
def mobilenet_v1_forward(x_nchw, params):
    tap_dtype = _tap_dtype()
    vlim = _vmem_limit_bytes()
    x = jnp.transpose(x_nchw, (0, 2, 3, 1)).astype(jnp.bfloat16)  # NCHW -> NHWC, bf16
    # stage1[0]: conv_bn(3, 8, stride=2, leaky=0.1)
    x = conv0_bn_act(x, params['conv0_w'], params['conv0_b'],
                     stride=2, slope=LEAKY_SLOPE, vmem_limit=vlim)
    # remaining stage1 + stage2 + stage3: fused conv_dw blocks (leaky=0.1)
    for layer in params['dw']:
        x = dw_pw_block(x, layer, LEAKY_SLOPE, tap_dtype, vlim)
    # AdaptiveAvgPool2d((1,1)) + view(-1, 256) + fc (fused)
    logits = avg_fc(x, params['fc_w'], params['fc_b'], vlim)      # (N, 1024)
    return logits[:, :1000]                                       # drop lane padding


if __name__ == "__main__":
    key = jax.random.PRNGKey(0)
    pkey, xkey = jax.random.split(key)
    params = init_params(pkey)
    # Small input consistent with the module: batch=2, 3 channels, 32x32 spatial
    # (32 = 2^5 survives the five stride-2 downsamples to a 1x1 feature map).
    x = jax.random.normal(xkey, (2, 3, 32, 32), jnp.float32)
    out = mobilenet_v1_forward(x, params)
    out = jax.block_until_ready(out)
    assert out.shape == (2, 1000), out.shape
    assert bool(jnp.all(jnp.isfinite(out)))
    print("KERNEL_OK")
</pallas_src>

<mosaic_0001>
module attributes {stable_mosaic.version = 11 : i64} {
  func.func @_matmul_bias_act_kernel(%arg0: i32, %arg1: memref<512x32xbf16, #tpu.memory_space<vmem>>, %arg2: memref<32x8xbf16, #tpu.memory_space<vmem>>, %arg3: memref<1x8xf32, #tpu.memory_space<vmem>>, %arg4: memref<512x8xbf16, #tpu.memory_space<vmem>>) attributes {dimension_semantics = [#tpu.dimension_semantics<parallel>], iteration_bounds = array<i64: 1>, scalar_prefetch = 0 : i64, scratch_operands = 0 : i64, tpu.core_type = #tpu.core_type<tc>, window_params = [{transform_indices = @transform_0, window_bounds = array<i64: 512, 32>}, {pipeline_mode = #tpu.pipeline_mode<synchronous>, transform_indices = @transform_1, window_bounds = array<i64: 32, 8>}, {pipeline_mode = #tpu.pipeline_mode<synchronous>, transform_indices = @transform_2, window_bounds = array<i64: 1, 8>}, {transform_indices = @transform_3, window_bounds = array<i64: 512, 8>}]} {
    %c0 = arith.constant 0 : index
    %c0_0 = arith.constant 0 : index
    %0 = vector.load %arg1[%c0, %c0_0] : memref<512x32xbf16, #tpu.memory_space<vmem>>, vector<512x32xbf16>
    %c0_1 = arith.constant 0 : index
    %c0_2 = arith.constant 0 : index
    %1 = vector.load %arg2[%c0_1, %c0_2] : memref<32x8xbf16, #tpu.memory_space<vmem>>, vector<32x8xbf16>
    %cst = arith.constant dense<0.000000e+00> : vector<512x8xf32>
    %2 = tpu.matmul %0, %1, %cst {dimension_numbers = #tpu.dot_dimension_numbers<[1], [0], [0], [1], [0, 0, 1, 1], [], []>} : vector<512x32xbf16>, vector<32x8xbf16>, vector<512x8xf32> -> vector<512x8xf32>
    %c0_3 = arith.constant 0 : index
    %c0_4 = arith.constant 0 : index
    %3 = vector.load %arg3[%c0_3, %c0_4] : memref<1x8xf32, #tpu.memory_space<vmem>>, vector<1x8xf32>
    %4 = vector.broadcast %3 : vector<1x8xf32> to vector<512x8xf32>
    %5 = arith.addf %2, %4 : vector<512x8xf32>
    %cst_5 = arith.constant 0.000000e+00 : f32
    %6 = vector.broadcast %cst_5 : f32 to vector<512x8xf32>
    %7 = arith.cmpf oge, %5, %6 : vector<512x8xf32>
    %cst_6 = arith.constant 1.000000e-01 : f32
    %8 = vector.broadcast %cst_6 : f32 to vector<512x8xf32>
    %9 = arith.mulf %8, %5 : vector<512x8xf32>
    %10 = arith.select %7, %5, %9 : vector<512x8xi1>, vector<512x8xf32>
    %11 = arith.truncf %10 : vector<512x8xf32> to vector<512x8xbf16>
    %c0_7 = arith.constant 0 : index
    %c0_8 = arith.constant 0 : index
    %12 = vector.load %arg4[%c0_7, %c0_8] : memref<512x8xbf16, #tpu.memory_space<vmem>>, vector<512x8xbf16>
    tpu.vector_store %arg4[%c0_7, %c0_8], %11 {strides = array<i32>} : memref<512x8xbf16, #tpu.memory_space<vmem>>, vector<512x8xbf16>,
    return
  }
  func.func @transform_0(%arg0: i32) -> (i32, i32) {
    %c0_i32 = arith.constant 0 : i32
    %c0_i32_0 = arith.constant 0 : i32
    return %arg0, %c0_i32 : i32, i32
  }
  func.func @transform_1(%arg0: i32) -> (i32, i32) {
    %c0_i32 = arith.constant 0 : i32
    %c0_i32_0 = arith.constant 0 : i32
    %c0_i32_1 = arith.constant 0 : i32
    return %c0_i32, %c0_i32_0 : i32, i32
  }
  func.func @transform_2(%arg0: i32) -> (i32, i32) {
    %c0_i32 = arith.constant 0 : i32
    %c0_i32_0 = arith.constant 0 : i32
    %c0_i32_1 = arith.constant 0 : i32
    return %c0_i32, %c0_i32_0 : i32, i32
  }
  func.func @transform_3(%arg0: i32) -> (i32, i32) {
    %c0_i32 = arith.constant 0 : i32
    %c0_i32_0 = arith.constant 0 : i32
    return %arg0, %c0_i32 : i32, i32
  }
}

</mosaic_0001>

<bundles_post_ra>
// kernel: tpu_custom_call.1
= control target key start
LH: loop header
LB: loop body
LE: loop exit
PB: predicated region body
PF: predicated region fallthrough
CT: control target
= control target key end

     0   :  { %vm262_vm0 = vcmask 261120   ;;  %vm1096_vm1 = vcmask 60416   ;;  %s2058_s1 = inlined_call_operand.vmem [shape: bf16[32,8], index: 1, kind: input, shape index: {}]   ;;  %s2059_s0 = inlined_call_operand.vmem [shape: bf16[512,32], index: 0, kind: input, shape index: {}]   ;;  %s2060_s2 = inlined_call_operand.vmem [shape: f32[1,8], index: 2, kind: input, shape index: {}]   ;;  %s2061_s3 = inlined_call_operand.vmem [shape: bf16[512,8], index: 3, kind: output, shape index: {}]  }
   0x1   :  { %v1466_v0 = vld [vmem:[%s2058_s1] sm:$0xff]   ;;  %v1467_v1 = vld [vmem:[%s2058_s1 + $0x8] sm:$0xff]   ;;  %v1472_v6 = vld [vmem:[%s2059_s0 + $0x10] sm:$0xff]  }
   0x2   :  { %1394 = vmatprep.subr.bf16.mxu0 %v1466_v0  ;;  %1462 = vmatprep.subr.bf16.mxu1 %v1466_v0  ;;  %v1468_v2 = vld [vmem:[%s2059_s0] sm:$0xff]   ;;  %v1470_v4 = vld [vmem:[%s2059_s0 + $0x8] sm:$0xff]   ;;  %v1473_v7 = vld [vmem:[%s2059_s0 + $0x90] sm:$0xff]  }
   0x3   :  { %1395 = vmatpush3.bf16.msra.mxu0 %v1466_v0  ;;  %1464 = vmatpush3.bf16.msra.mxu1 %v1466_v0  ;;  %v1469_v3 = vld [vmem:[%s2059_s0 + $0x80] sm:$0xff]   ;;  %v1471_v5 = vld [vmem:[%s2059_s0 + $0x88] sm:$0xff]   ;;  %v1474_v8 = vld [vmem:[%s2059_s0 + $0x18] sm:$0xff]  }
   0x4   :  { %1396 = vmatprep.subr.bf16.mxu0 %v1467_v1  ;;  %1463 = vmatprep.subr.bf16.mxu1 %v1467_v1  ;;  %v1475_v9 = vld [vmem:[%s2059_s0 + $0x98] sm:$0xff]   ;;  %v1476_v10 = vld [vmem:[%s2059_s0 + $0x20] sm:$0xff]   ;;  %v1478_v12 = vld [vmem:[%s2059_s0 + $0x28] sm:$0xff]  }
   0x5   :  { %1398 = vmatprep.mubr.msk.bf16.mxu0 %vm262_vm0, %v1468_v2  ;;  %1430 = vmatprep.mubr.msk.bf16.mxu1 %vm262_vm0, %v1469_v3  ;;  %v1477_v11 = vld [vmem:[%s2059_s0 + $0xa0] sm:$0xff]   ;;  %v1479_v13 = vld [vmem:[%s2059_s0 + $0xa8] sm:$0xff]   ;;  %v1480_v14 = vld [vmem:[%s2059_s0 + $0x30] sm:$0xff]  }
   0x6   :  { %v1481_v15 = vld [vmem:[%s2059_s0 + $0xb0] sm:$0xff]   ;;  %v1482_v16 = vld [vmem:[%s2059_s0 + $0x38] sm:$0xff]   ;;  %v1484_v18 = vld [vmem:[%s2059_s0 + $0x40] sm:$0xff]  }
   0x7   :  { %1397 = vmatpush3.bf16.msra.mxu0 %v1467_v1  ;;  %1465 = vmatpush3.bf16.msra.mxu1 %v1467_v1  ;;  %v1483_v17 = vld [vmem:[%s2059_s0 + $0xb8] sm:$0xff]   ;;  %v1485_v19 = vld [vmem:[%s2059_s0 + $0xc0] sm:$0xff]   ;;  %v1486_v20 = vld [vmem:[%s2059_s0 + $0x48] sm:$0xff]  }
   0x8   :  { %v1487_v21 = vld [vmem:[%s2059_s0 + $0xc8] sm:$0xff]   ;;  %v1488_v22 = vld [vmem:[%s2059_s0 + $0x50] sm:$0xff]   ;;  %v1490_v24 = vld [vmem:[%s2059_s0 + $0x58] sm:$0xff]  }
   0x9   :  { %v1489_v23 = vld [vmem:[%s2059_s0 + $0xd0] sm:$0xff]   ;;  %v1491_v25 = vld [vmem:[%s2059_s0 + $0xd8] sm:$0xff]   ;;  %v1492_v26 = vld [vmem:[%s2059_s0 + $0x60] sm:$0xff]  }
   0xa   :  { %1399 = vmatmul.mubr.msk.bf16.vlgmr.msra.gmra.mrb[0].mxu0 %vm262_vm0, %v1470_v4  ;;  %1431 = vmatmul.mubr.msk.bf16.vlgmr.msra.gmra.mrb[0].mxu1 %vm262_vm0, %v1471_v5  ;;  %v1493_v27 = vld [vmem:[%s2059_s0 + $0xe0] sm:$0xff]   ;;  %v1494_v28 = vld [vmem:[%s2059_s0 + $0x68] sm:$0xff]   ;;  %v1496_v30 = vld [vmem:[%s2059_s0 + $0x70] sm:$0xff]  }
   0xb   :  { %1402 = vmatprep.mubr.msk.bf16.mxu0 %vm262_vm0, %v1472_v6  ;;  %1434 = vmatprep.mubr.msk.bf16.mxu1 %vm262_vm0, %v1473_v7  ;;  %v1495_v29 = vld [vmem:[%s2059_s0 + $0xe8] sm:$0xff]   ;;  %v1497_v31 = vld [vmem:[%s2059_s0 + $0xf0] sm:$0xff]   ;;  %v1498_v32 = vld [vmem:[%s2059_s0 + $0x78] sm:$0xff]  }
   0xc   :  { %v1499_v33 = vld [vmem:[%s2059_s0 + $0xf8] sm:$0xff]   ;;  %v1657_v34 = vld [vmem:[%s2060_s2] ss:$0 sm:$0xff] }
  0x12   :  { %1403 = vmatmul.mubr.msk.bf16.gmra.mrb[4].mxu0 %vm262_vm0, %v1474_v8  ;;  %1435 = vmatmul.mubr.msk.bf16.gmra.mrb[4].mxu1 %vm262_vm0, %v1475_v9 }
  0x13   :  { %1406 = vmatprep.mubr.msk.bf16.mxu0 %vm262_vm0, %v1476_v10  ;;  %1438 = vmatprep.mubr.msk.bf16.mxu1 %vm262_vm0, %v1477_v11 }
  0x1a   :  { %1407 = vmatmul.mubr.msk.bf16.gmra.mrb[8].mxu0 %vm262_vm0, %v1478_v12  ;;  %1439 = vmatmul.mubr.msk.bf16.gmra.mrb[8].mxu1 %vm262_vm0, %v1479_v13 }
  0x1b   :  { %1410 = vmatprep.mubr.msk.bf16.mxu0 %vm262_vm0, %v1480_v14  ;;  %1442 = vmatprep.mubr.msk.bf16.mxu1 %vm262_vm0, %v1481_v15 }
  0x22   :  { %1411 = vmatmul.mubr.msk.bf16.gmra.mrb[12].mxu0 %vm262_vm0, %v1482_v16  ;;  %1443 = vmatmul.mubr.msk.bf16.gmra.mrb[12].mxu1 %vm262_vm0, %v1483_v17 }
  0x23   :  { %1414 = vmatprep.mubr.msk.bf16.mxu0 %vm262_vm0, %v1484_v18  ;;  %1446 = vmatprep.mubr.msk.bf16.mxu1 %vm262_vm0, %v1485_v19 }
  0x2a   :  { %1415 = vmatmul.mubr.msk.bf16.gmra.mrb[16].mxu0 %vm262_vm0, %v1486_v20  ;;  %1447 = vmatmul.mubr.msk.bf16.gmra.mrb[16].mxu1 %vm262_vm0, %v1487_v21 }
  0x2b   :  { %1418 = vmatprep.mubr.msk.bf16.mxu0 %vm262_vm0, %v1488_v22  ;;  %1450 = vmatprep.mubr.msk.bf16.mxu1 %vm262_vm0, %v1489_v23 }
  0x32   :  { %1419 = vmatmul.mubr.msk.bf16.gmra.mrb[20].mxu0 %vm262_vm0, %v1490_v24  ;;  %1451 = vmatmul.mubr.msk.bf16.gmra.mrb[20].mxu1 %vm262_vm0, %v1491_v25 }
  0x33   :  { %1422 = vmatprep.mubr.msk.bf16.mxu0 %vm262_vm0, %v1492_v26  ;;  %1454 = vmatprep.mubr.msk.bf16.mxu1 %vm262_vm0, %v1493_v27 }
  0x3a   :  { %1423 = vmatmul.mubr.msk.bf16.gmra.mrb[24].mxu0 %vm262_vm0, %v1494_v28  ;;  %1455 = vmatmul.mubr.msk.bf16.gmra.mrb[24].mxu1 %vm262_vm0, %v1495_v29 }
  0x3b   :  { %1426 = vmatprep.mubr.msk.bf16.mxu0 %vm262_vm0, %v1496_v30  ;;  %1458 = vmatprep.mubr.msk.bf16.mxu1 %vm262_vm0, %v1497_v31 }
  0x42   :  { %1427 = vmatmul.mubr.msk.bf16.gmra.mrb[28].mxu0 %vm262_vm0, %v1498_v32  ;;  %1459 = vmatmul.mubr.msk.bf16.gmra.mrb[28].mxu1 %vm262_vm0, %v1499_v33 }
  0xdd   :  { %v1400_v35 = vpop.f32.mrb[0].mxu0  ;;  %v1432_v36 = vpop.f32.mrb[0].mxu1 }
  0xde   :  { %v402_v37 = vadd.f32 %v1400_v35, %v1657_v34  ;;  %v530_v38 = vadd.f32 %v1432_v36, %v1657_v34  ;;  %v393_v39 = vpop.f32.mrb[1].mxu0  ;;  %v521_v40 = vpop.f32.mrb[1].mxu1 }
  0xdf   :  { %v394_v41 = vadd.f32 %v1657_v34, %v393_v39  ;;  %v522_v42 = vadd.f32 %v1657_v34, %v521_v40  ;;  %v1401_v43 = vpop.f32.mrb[2].mxu0  ;;  %v1433_v44 = vpop.f32.mrb[2].mxu1 }
  0xe0   :  { %vm650_vm2 = vcmp.ge.f32.partialorder %v402_v37, 0.0  ;;  %v714_v45 = vmul.f32 0.1, %v402_v37  ;;  %vm682_vm3 = vcmp.ge.f32.partialorder %v530_v38, 0.0  ;;  %v746_v46 = vmul.f32 0.1, %v530_v38 }
  0xe1   :  { %vm648_vm4 = vcmp.ge.f32.partialorder %v394_v41, 0.0  ;;  %v712_v47 = vmul.f32 0.1, %v394_v41  ;;  %vm680_vm5 = vcmp.ge.f32.partialorder %v522_v42, 0.0  ;;  %v744_v48 = vmul.f32 0.1, %v522_v42 }
  0xe2   :  { %v778_v49 = vsel %vm650_vm2, %v402_v37, %v714_v45  ;;  %v810_v50 = vsel %vm682_vm3, %v530_v38, %v746_v46  ;;  %v405_v51 = vadd.f32 %v1401_v43, %v1657_v34  ;;  %v533_v52 = vadd.f32 %v1433_v44, %v1657_v34  ;;  %v396_v53 = vpop.f32.mrb[3].mxu0  ;;  %v524_v54 = vpop.f32.mrb[3].mxu1 }
  0xe3   :  { %v1298_v55 = vpack.c.bf16 %v778_v49, %v778_v49  ;;  %v1330_v56 = vpack.c.bf16 %v810_v50, %v810_v50  ;;  %v776_v57 = vsel %vm648_vm4, %v394_v41, %v712_v47  ;;  %v808_v58 = vsel %vm680_vm5, %v522_v42, %v744_v48 }
  0xe4   :  { %v1296_v59 = vpack.c.bf16 %v776_v57, %v776_v57  ;;  %v1328_v60 = vpack.c.bf16 %v808_v58, %v808_v58  ;;  %vm651_vm6 = vcmp.ge.f32.partialorder %v405_v51, 0.0  ;;  %v715_v61 = vmul.f32 0.1, %v405_v51 }
  0xe5   :  { %1099 = vst.msk [vmem:[%s2061_s3 + $0x8] sm:$0xf] %vm1096_vm1, %v1298_v55  ;;  %1131 = vst.msk [vmem:[%s2061_s3 + $0x88] sm:$0xf] %vm1096_vm1, %v1330_v56  ;;  %vm683_vm7 = vcmp.ge.f32.partialorder %v533_v52, 0.0  ;;  %v397_v63 = vadd.f32 %v1657_v34, %v396_v53  ;;  %v525_v0 = vadd.f32 %v1657_v34, %v524_v54  ;;  %v1404_v1 = vpop.f32.mrb[4].mxu0 }
  0xe6   :  { %v747_v62 = vmul.f32 0.1, %v533_v52  ;;  %v1436_v2 = vpop.f32.mrb[4].mxu1  ;;  %1097 = vst.msk [vmem:[%s2061_s3] sm:$0xf] %vm1096_vm1, %v1296_v59  ;;  %v779_v3 = vsel %vm651_vm6, %v405_v51, %v715_v61  ;;  %v418_v4 = vadd.f32 %v1404_v1, %v1657_v34  ;;  %v409_v6 = vpop.f32.mrb[5].mxu0 }
  0xe7   :  { %1129 = vst.msk [vmem:[%s2061_s3 + $0x80] sm:$0xf] %vm1096_vm1, %v1328_v60  ;;  %v546_v5 = vadd.f32 %v1436_v2, %v1657_v34  ;;  %v537_v7 = vpop.f32.mrb[5].mxu1  ;;  %v1299_v8 = vpack.c.bf16 %v779_v3, %v779_v3  ;;  %vm649_vm8 = vcmp.ge.f32.partialorder %v397_v63, 0.0  ;;  %v713_v10 = vmul.f32 0.1, %v397_v63 }
  0xe8   :  { %v811_v9 = vsel %vm683_vm7, %v533_v52, %v747_v62  ;;  %v1405_v11 = vpop.f32.mrb[6].mxu0  ;;  %v1437_v12 = vpop.f32.mrb[6].mxu1  ;;  %vm681_vm9 = vcmp.ge.f32.partialorder %v525_v0, 0.0  ;;  %v745_v14 = vmul.f32 0.1, %v525_v0  ;;  %vm654_vm10 = vcmp.ge.f32.partialorder %v418_v4, 0.0 }
  0xe9   :  { %v1331_v13 = vpack.c.bf16 %v811_v9, %v811_v9  ;;  %v412_v15 = vpop.f32.mrb[7].mxu0  ;;  %v540_v16 = vpop.f32.mrb[7].mxu1  ;;  %1100 = vst.msk [vmem:[%s2061_s3 + $0xc] sm:$0xf] %vm1096_vm1, %v1299_v8  ;;  %v777_v17 = vsel %vm649_vm8, %v397_v63, %v713_v10  ;;  %v718_v18 = vmul.f32 0.1, %v418_v4  ;;  %v410_v22 = vadd.f32 %v1657_v34, %v409_v6 }
  0xea   :  { %vm686_vm11 = vcmp.ge.f32.partialorder %v546_v5, 0.0  ;;  %v750_v19 = vmul.f32 0.1, %v546_v5  ;;  %v1297_v20 = vpack.c.bf16 %v777_v17, %v777_v17  ;;  %v809_v21 = vsel %vm681_vm9, %v525_v0, %v745_v14 }
  0xeb   :  { %1132 = vst.msk [vmem:[%s2061_s3 + $0x8c] sm:$0xf] %vm1096_vm1, %v1331_v13  ;;  %v538_v23 = vadd.f32 %v1657_v34, %v537_v7  ;;  %v1329_v24 = vpack.c.bf16 %v809_v21, %v809_v21  ;;  %v782_v25 = vsel %vm654_vm10, %v418_v4, %v718_v18  ;;  %v421_v27 = vadd.f32 %v1405_v11, %v1657_v34 }
  0xec   :  { %v814_v26 = vsel %vm686_vm11, %v546_v5, %v750_v19  ;;  %1098 = vst.msk [vmem:[%s2061_s3 + $0x4] sm:$0xf] %vm1096_vm1, %v1297_v20  ;;  %v1302_v28 = vpack.c.bf16 %v782_v25, %v782_v25  ;;  %vm652_vm12 = vcmp.ge.f32.partialorder %v410_v22, 0.0  ;;  %v716_v30 = vmul.f32 0.1, %v410_v22 }
  0xed   :  { %v1334_v29 = vpack.c.bf16 %v814_v26, %v814_v26  ;;  %1130 = vst.msk [vmem:[%s2061_s3 + $0x84] sm:$0xf] %vm1096_vm1, %v1329_v24  ;;  %vm684_vm13 = vcmp.ge.f32.partialorder %v538_v23, 0.0  ;;  %v748_v31 = vmul.f32 0.1, %v538_v23  ;;  %vm655_vm14 = vcmp.ge.f32.partialorder %v421_v27, 0.0 }
  0xee   :  { %v719_v32 = vmul.f32 0.1, %v421_v27  ;;  %1103 = vst.msk [vmem:[%s2061_s3 + $0x18] sm:$0xf] %vm1096_vm1, %v1302_v28  ;;  %v780_v33 = vsel %vm652_vm12, %v410_v22, %v716_v30  ;;  %v549_v35 = vadd.f32 %v1437_v12, %v1657_v34  ;;  %v413_v36 = vadd.f32 %v1657_v34, %v412_v15  ;;  %v1408_v38 = vpop.f32.mrb[8].mxu0  ;;  %v1440_v39 = vpop.f32.mrb[8].mxu1 }
  0xef   :  { %1135 = vst.msk [vmem:[%s2061_s3 + $0x98] sm:$0xf] %vm1096_vm1, %v1334_v29  ;;  %v541_v37 = vadd.f32 %v1657_v34, %v540_v16  ;;  %v1300_v40 = vpack.c.bf16 %v780_v33, %v780_v33  ;;  %v812_v41 = vsel %vm684_vm13, %v538_v23, %v748_v31  ;;  %v434_v43 = vadd.f32 %v1408_v38, %v1657_v34  ;;  %v425_v44 = vpop.f32.mrb[9].mxu0  ;;  %v553_v45 = vpop.f32.mrb[9].mxu1 }
  0xf0   :  { %v783_v42 = vsel %vm655_vm14, %v421_v27, %v719_v32  ;;  %v1332_v46 = vpack.c.bf16 %v812_v41, %v812_v41  ;;  %vm687_vm15 = vcmp.ge.f32.partialorder %v549_v35, 0.0  ;;  %v751_v48 = vmul.f32 0.1, %v549_v35  ;;  %v1409_v49 = vpop.f32.mrb[10].mxu0  ;;  %v1441_v50 = vpop.f32.mrb[10].mxu1 }
  0xf1   :  { %v1303_v47 = vpack.c.bf16 %v783_v42, %v783_v42  ;;  %1101 = vst.msk [vmem:[%s2061_s3 + $0x10] sm:$0xf] %vm1096_vm1, %v1300_v40  ;;  %vm653_vm0 = vcmp.ge.f32.partialorder %v413_v36, 0.0  ;;  %v717_v51 = vmul.f32 0.1, %v413_v36  ;;  %vm685_vm2 = vcmp.ge.f32.partialorder %v541_v37, 0.0 }
  0xf2   :  { %v749_v52 = vmul.f32 0.1, %v541_v37  ;;  %1133 = vst.msk [vmem:[%s2061_s3 + $0x90] sm:$0xf] %vm1096_vm1, %v1332_v46  ;;  %v815_v53 = vsel %vm687_vm15, %v549_v35, %v751_v48  ;;  %vm658_vm3 = vcmp.ge.f32.partialorder %v434_v43, 0.0  ;;  %v562_v55 = vadd.f32 %v1440_v39, %v1657_v34  ;;  %v428_v56 = vpop.f32.mrb[11].mxu0 }
  0xf3   :  { %1104 = vst.msk [vmem:[%s2061_s3 + $0x1c] sm:$0xf] %vm1096_vm1, %v1303_v47  ;;  %v722_v54 = vmul.f32 0.1, %v434_v43  ;;  %v556_v57 = vpop.f32.mrb[11].mxu1  ;;  %v1335_v58 = vpack.c.bf16 %v815_v53, %v815_v53  ;;  %v781_v59 = vsel %vm653_vm0, %v413_v36, %v717_v51  ;;  %v426_v61 = vadd.f32 %v1657_v34, %v425_v44 }
  0xf4   :  { %v813_v60 = vsel %vm685_vm2, %v541_v37, %v749_v52  ;;  %v1301_v62 = vpack.c.bf16 %v781_v59, %v781_v59  ;;  %vm690_vm4 = vcmp.ge.f32.partialorder %v562_v55, 0.0  ;;  %v754_v2 = vmul.f32 0.1, %v562_v55 }
  0xf5   :  { %v1333_v63 = vpack.c.bf16 %v813_v60, %v813_v60  ;;  %v786_v0 = vsel %vm658_vm3, %v434_v43, %v722_v54  ;;  %1136 = vst.msk [vmem:[%s2061_s3 + $0x9c] sm:$0xf] %vm1096_vm1, %v1335_v58  ;;  %vm656_vm5 = vcmp.ge.f32.partialorder %v426_v61, 0.0  ;;  %v720_v3 = vmul.f32 0.1, %v426_v61  ;;  %v1412_v4 = vpop.f32.mrb[12].mxu0 }
  0xf6   :  { %v1306_v1 = vpack.c.bf16 %v786_v0, %v786_v0  ;;  %1102 = vst.msk [vmem:[%s2061_s3 + $0x14] sm:$0xf] %vm1096_vm1, %v1301_v62  ;;  %v554_v5 = vadd.f32 %v1657_v34, %v553_v45  ;;  %v437_v6 = vadd.f32 %v1409_v49, %v1657_v34  ;;  %v565_v7 = vadd.f32 %v1441_v50, %v1657_v34  ;;  %v1444_v9 = vpop.f32.mrb[12].mxu1  ;;  %v441_v10 = vpop.f32.mrb[13].mxu0 }
  0xf7   :  { %1134 = vst.msk [vmem:[%s2061_s3 + $0x94] sm:$0xf] %vm1096_vm1, %v1333_v63  ;;  %v429_v8 = vadd.f32 %v1657_v34, %v428_v56  ;;  %v818_v11 = vsel %vm690_vm4, %v562_v55, %v754_v2  ;;  %v784_v12 = vsel %vm656_vm5, %v426_v61, %v720_v3  ;;  %v557_v13 = vadd.f32 %v1657_v34, %v556_v57  ;;  %v569_v15 = vpop.f32.mrb[13].mxu1  ;;  %v1413_v16 = vpop.f32.mrb[14].mxu0 }
  0xf8   :  { %1107 = vst.msk [vmem:[%s2061_s3 + $0x28] sm:$0xf] %vm1096_vm1, %v1306_v1  ;;  %v450_v14 = vadd.f32 %v1412_v4, %v1657_v34  ;;  %v1338_v17 = vpack.c.bf16 %v818_v11, %v818_v11  ;;  %v1304_v18 = vpack.c.bf16 %v784_v12, %v784_v12  ;;  %vm688_vm6 = vcmp.ge.f32.partialorder %v554_v5, 0.0  ;;  %v1445_v20 = vpop.f32.mrb[14].mxu1  ;;  %v444_v21 = vpop.f32.mrb[15].mxu0 }
  0xf9   :  { %v752_v19 = vmul.f32 0.1, %v554_v5  ;;  %vm659_vm7 = vcmp.ge.f32.partialorder %v437_v6, 0.0  ;;  %v723_v22 = vmul.f32 0.1, %v437_v6  ;;  %vm691_vm8 = vcmp.ge.f32.partialorder %v565_v7, 0.0 }
  0xfa   :  { %v755_v23 = vmul.f32 0.1, %v565_v7  ;;  %1139 = vst.msk [vmem:[%s2061_s3 + $0xa8] sm:$0xf] %vm1096_vm1, %v1338_v17  ;;  %1105 = vst.msk [vmem:[%s2061_s3 + $0x20] sm:$0xf] %vm1096_vm1, %v1304_v18  ;;  %v578_v38 = vadd.f32 %v1444_v9, %v1657_v34  ;;  %v442_v42 = vadd.f32 %v1657_v34, %v441_v10  ;;  %v570_v43 = vadd.f32 %v1657_v34, %v569_v15 }
  0xfb   :  { %v816_v24 = vsel %vm688_vm6, %v554_v5, %v752_v19  ;;  %vm657_vm9 = vcmp.ge.f32.partialorder %v429_v8, 0.0  ;;  %v721_v25 = vmul.f32 0.1, %v429_v8  ;;  %vm689_vm10 = vcmp.ge.f32.partialorder %v557_v13, 0.0  ;;  %v572_v26 = vpop.f32.mrb[15].mxu1 }
  0xfc   :  { %v1336_v27 = vpack.c.bf16 %v816_v24, %v816_v24  ;;  %v787_v28 = vsel %vm659_vm7, %v437_v6, %v723_v22  ;;  %v819_v29 = vsel %vm691_vm8, %v565_v7, %v755_v23  ;;  %v753_v30 = vmul.f32 0.1, %v557_v13 }
  0xfd   :  { %v1307_v31 = vpack.c.bf16 %v787_v28, %v787_v28  ;;  %v1339_v32 = vpack.c.bf16 %v819_v29, %v819_v29  ;;  %v785_v33 = vsel %vm657_vm9, %v429_v8, %v721_v25  ;;  %vm662_vm11 = vcmp.ge.f32.partialorder %v450_v14, 0.0  ;;  %v1416_v39 = vpop.f32.mrb[16].mxu0  ;;  %v1448_v40 = vpop.f32.mrb[16].mxu1 }
  0xfe   :  { %1137 = vst.msk [vmem:[%s2061_s3 + $0xa0] sm:$0xf] %vm1096_vm1, %v1336_v27  ;;  %v1305_v35 = vpack.c.bf16 %v785_v33, %v785_v33  ;;  %v817_v36 = vsel %vm689_vm10, %v557_v13, %v753_v30  ;;  %v726_v37 = vmul.f32 0.1, %v450_v14  ;;  %v453_v44 = vadd.f32 %v1413_v16, %v1657_v34  ;;  %v457_v45 = vpop.f32.mrb[17].mxu0  ;;  %v585_v46 = vpop.f32.mrb[17].mxu1 }
  0xff   :  { %1108 = vst.msk [vmem:[%s2061_s3 + $0x2c] sm:$0xf] %vm1096_vm1, %v1307_v31  ;;  %1140 = vst.msk [vmem:[%s2061_s3 + $0xac] sm:$0xf] %vm1096_vm1, %v1339_v32  ;;  %v1337_v41 = vpack.c.bf16 %v817_v36, %v817_v36  ;;  %vm694_vm12 = vcmp.ge.f32.partialorder %v578_v38, 0.0  ;;  %v581_v49 = vadd.f32 %v1445_v20, %v1657_v34  ;;  %v1783_v50 = vpop.f32.mrb[18].mxu0  ;;  %v445_v1 = vadd.f32 %v1657_v34, %v444_v21 }
 0x100   :  { %1106 = vst.msk [vmem:[%s2061_s3 + $0x24] sm:$0xf] %vm1096_vm1, %v1305_v35  ;;  %v790_v47 = vsel %vm662_vm11, %v450_v14, %v726_v37  ;;  %v758_v48 = vmul.f32 0.1, %v578_v38  ;;  %v1785_v51 = vpop.f32.mrb[18].mxu1  ;;  %vm660_vm13 = vcmp.ge.f32.partialorder %v442_v42, 0.0  ;;  %v573_v5 = vadd.f32 %v1657_v34, %v572_v26 }
 0x101   :  { %1138 = vst.msk [vmem:[%s2061_s3 + $0xa4] sm:$0xf] %vm1096_vm1, %v1337_v41  ;;  %v1310_v52 = vpack.c.bf16 %v790_v47, %v790_v47  ;;  %v724_v53 = vmul.f32 0.1, %v442_v42  ;;  %vm692_vm14 = vcmp.ge.f32.partialorder %v570_v43, 0.0  ;;  %v1791_v54 = vpop.f32.mrb[19].mxu0  ;;  %v466_v8 = vadd.f32 %v1416_v39, %v1657_v34 }
 0x102   :  { %v1793_v55 = vpop.f32.mrb[19].mxu1  ;;  %v822_v56 = vsel %vm694_vm12, %v578_v38, %v758_v48  ;;  %v756_v57 = vmul.f32 0.1, %v570_v43  ;;  %vm663_vm15 = vcmp.ge.f32.partialorder %v453_v44, 0.0  ;;  %v727_v58 = vmul.f32 0.1, %v453_v44 }
 0x103   :  { %1111 = vst.msk [vmem:[%s2061_s3 + $0x38] sm:$0xf] %vm1096_vm1, %v1310_v52  ;;  %v1342_v59 = vpack.c.bf16 %v822_v56, %v822_v56  ;;  %v788_v60 = vsel %vm660_vm13, %v442_v42, %v724_v53  ;;  %vm695_vm0 = vcmp.ge.f32.partialorder %v581_v49, 0.0  ;;  %v759_v61 = vmul.f32 0.1, %v581_v49 }
 0x104   :  { %v1308_v62 = vpack.c.bf16 %v788_v60, %v788_v60  ;;  %v820_v63 = vsel %vm692_vm14, %v570_v43, %v756_v57  ;;  %v791_v0 = vsel %vm663_vm15, %v453_v44, %v727_v58  ;;  %vm661_vm2 = vcmp.ge.f32.partialorder %v445_v1, 0.0 }
 0x105   :  { %1143 = vst.msk [vmem:[%s2061_s3 + $0xb8] sm:$0xf] %vm1096_vm1, %v1342_v59  ;;  %v1340_v2 = vpack.c.bf16 %v820_v63, %v820_v63  ;;  %v1311_v3 = vpack.c.bf16 %v791_v0, %v791_v0  ;;  %v823_v4 = vsel %vm695_vm0, %v581_v49, %v759_v61  ;;  %v725_v7 = vmul.f32 0.1, %v445_v1  ;;  %v1420_v9 = vpop.f32.mrb[20].mxu0  ;;  %v1452_v10 = vpop.f32.mrb[20].mxu1 }
 0x106   :  { %1109 = vst.msk [vmem:[%s2061_s3 + $0x30] sm:$0xf] %vm1096_vm1, %v1308_v62  ;;  %v1343_v6 = vpack.c.bf16 %v823_v4, %v823_v4  ;;  %vm693_vm3 = vcmp.ge.f32.partialorder %v573_v5, 0.0  ;;  %v757_v11 = vmul.f32 0.1, %v573_v5  ;;  %v594_v12 = vadd.f32 %v1448_v40, %v1657_v34  ;;  %v473_v14 = vpop.f32.mrb[21].mxu0 }
 0x107   :  { %1141 = vst.msk [vmem:[%s2061_s3 + $0xb0] sm:$0xf] %vm1096_vm1, %v1340_v2  ;;  %1112 = vst.msk [vmem:[%s2061_s3 + $0x3c] sm:$0xf] %vm1096_vm1, %v1311_v3  ;;  %v458_v13 = vadd.f32 %v1657_v34, %v457_v45  ;;  %v1820_v15 = vpop.f32.mrb[21].mxu1  ;;  %v789_v16 = vsel %vm661_vm2, %v445_v1, %v725_v7  ;;  %vm666_vm4 = vcmp.ge.f32.partialorder %v466_v8, 0.0  ;;  %v586_v18 = vadd.f32 %v1657_v34, %v585_v46 }
 0x108   :  { %1144 = vst.msk [vmem:[%s2061_s3 + $0xbc] sm:$0xf] %vm1096_vm1, %v1343_v6  ;;  %v730_v17 = vmul.f32 0.1, %v466_v8  ;;  %v1827_v19 = vpop.f32.mrb[22].mxu0  ;;  %v1829_v20 = vpop.f32.mrb[22].mxu1  ;;  %v1309_v21 = vpack.c.bf16 %v789_v16, %v789_v16  ;;  %v821_v22 = vsel %vm693_vm3, %v573_v5, %v757_v11  ;;  %v469_v35 = vadd.f32 %v1783_v50, %v1657_v34 }
 0x109   :  { %vm698_vm5 = vcmp.ge.f32.partialorder %v594_v12, 0.0  ;;  %v762_v23 = vmul.f32 0.1, %v594_v12  ;;  %v1831_v24 = vpop.f32.mrb[23].mxu0  ;;  %v1833_v25 = vpop.f32.mrb[23].mxu1  ;;  %v1341_v26 = vpack.c.bf16 %v821_v22, %v821_v22  ;;  %vm664_vm6 = vcmp.ge.f32.partialorder %v458_v13, 0.0 }
 0x10a   :  { %v794_v27 = vsel %vm666_vm4, %v466_v8, %v730_v17  ;;  %v728_v28 = vmul.f32 0.1, %v458_v13  ;;  %1110 = vst.msk [vmem:[%s2061_s3 + $0x34] sm:$0xf] %vm1096_vm1, %v1309_v21  ;;  %vm696_vm7 = vcmp.ge.f32.partialorder %v586_v18, 0.0  ;;  %v597_v36 = vadd.f32 %v1785_v51, %v1657_v34 }
 0x10b   :  { %v1314_v29 = vpack.c.bf16 %v794_v27, %v794_v27  ;;  %v826_v30 = vsel %vm698_vm5, %v594_v12, %v762_v23  ;;  %v760_v31 = vmul.f32 0.1, %v586_v18  ;;  %1142 = vst.msk [vmem:[%s2061_s3 + $0xb4] sm:$0xf] %vm1096_vm1, %v1341_v26  ;;  %v461_v39 = vadd.f32 %v1657_v34, %v1791_v54 }
 0x10c   :  { %v1346_v32 = vpack.c.bf16 %v826_v30, %v826_v30  ;;  %v792_v33 = vsel %vm664_vm6, %v458_v13, %v728_v28  ;;  %v589_v40 = vadd.f32 %v1657_v34, %v1793_v55  ;;  %vm667_vm8 = vcmp.ge.f32.partialorder %v469_v35, 0.0 }
 0x10d   :  { %1115 = vst.msk [vmem:[%s2061_s3 + $0x48] sm:$0xf] %vm1096_vm1, %v1314_v29  ;;  %v1312_v37 = vpack.c.bf16 %v792_v33, %v792_v33  ;;  %v824_v38 = vsel %vm696_vm7, %v586_v18, %v760_v31  ;;  %v731_v42 = vmul.f32 0.1, %v469_v35  ;;  %vm699_vm9 = vcmp.ge.f32.partialorder %v597_v36, 0.0  ;;  %v1859_v43 = vpop.f32.mrb[24].mxu0 }
 0x10e   :  { %1147 = vst.msk [vmem:[%s2061_s3 + $0xc8] sm:$0xf] %vm1096_vm1, %v1346_v32  ;;  %v1344_v41 = vpack.c.bf16 %v824_v38, %v824_v38  ;;  %v1861_v44 = vpop.f32.mrb[24].mxu1  ;;  %v763_v45 = vmul.f32 0.1, %v597_v36  ;;  %vm665_vm10 = vcmp.ge.f32.partialorder %v461_v39, 0.0  ;;  %v482_v49 = vadd.f32 %v1420_v9, %v1657_v34 }
 0x10f   :  { %1113 = vst.msk [vmem:[%s2061_s3 + $0x40] sm:$0xf] %vm1096_vm1, %v1312_v37  ;;  %v729_v46 = vmul.f32 0.1, %v461_v39  ;;  %vm697_vm11 = vcmp.ge.f32.partialorder %v589_v40, 0.0  ;;  %v795_v47 = vsel %vm667_vm8, %v469_v35, %v731_v42  ;;  %v610_v50 = vadd.f32 %v1452_v10, %v1657_v34  ;;  %v1873_v51 = vpop.f32.mrb[25].mxu0 }
 0x110   :  { %1145 = vst.msk [vmem:[%s2061_s3 + $0xc0] sm:$0xf] %vm1096_vm1, %v1344_v41  ;;  %v761_v48 = vmul.f32 0.1, %v589_v40  ;;  %v1875_v52 = vpop.f32.mrb[25].mxu1  ;;  %v1315_v53 = vpack.c.bf16 %v795_v47, %v795_v47  ;;  %v827_v54 = vsel %vm699_vm9, %v597_v36, %v763_v45  ;;  %v474_v56 = vadd.f32 %v1657_v34, %v473_v14  ;;  %v1879_v57 = vpop.f32.mrb[26].mxu0 }
 0x111   :  { %v793_v55 = vsel %vm665_vm10, %v461_v39, %v729_v46  ;;  %v1881_v58 = vpop.f32.mrb[26].mxu1  ;;  %v1347_v59 = vpack.c.bf16 %v827_v54, %v827_v54  ;;  %vm670_vm12 = vcmp.ge.f32.partialorder %v482_v49, 0.0  ;;  %v1884_v62 = vpop.f32.mrb[27].mxu0  ;;  %v734_v1 = vmul.f32 0.1, %v482_v49 }
 0x112   :  { %v1313_v60 = vpack.c.bf16 %v793_v55, %v793_v55  ;;  %v825_v61 = vsel %vm697_vm11, %v589_v40, %v761_v48  ;;  %v1886_v63 = vpop.f32.mrb[27].mxu1  ;;  %1116 = vst.msk [vmem:[%s2061_s3 + $0x4c] sm:$0xf] %vm1096_vm1, %v1315_v53  ;;  %vm702_vm13 = vcmp.ge.f32.partialorder %v610_v50, 0.0  ;;  %v766_v2 = vmul.f32 0.1, %v610_v50 }
 0x113   :  { %v1345_v0 = vpack.c.bf16 %v825_v61, %v825_v61  ;;  %1148 = vst.msk [vmem:[%s2061_s3 + $0xcc] sm:$0xf] %vm1096_vm1, %v1347_v59  ;;  %vm668_vm14 = vcmp.ge.f32.partialorder %v474_v56, 0.0  ;;  %v732_v3 = vmul.f32 0.1, %v474_v56  ;;  %v602_v4 = vadd.f32 %v1657_v34, %v1820_v15 }
 0x114   :  { %1114 = vst.msk [vmem:[%s2061_s3 + $0x44] sm:$0xf] %vm1096_vm1, %v1313_v60  ;;  %v485_v5 = vadd.f32 %v1827_v19, %v1657_v34  ;;  %v798_v6 = vsel %vm670_vm12, %v482_v49, %v734_v1  ;;  %v830_v7 = vsel %vm702_vm13, %v610_v50, %v766_v2  ;;  %v613_v8 = vadd.f32 %v1829_v20, %v1657_v34 }
 0x115   :  { %1146 = vst.msk [vmem:[%s2061_s3 + $0xc4] sm:$0xf] %vm1096_vm1, %v1345_v0  ;;  %v477_v9 = vadd.f32 %v1657_v34, %v1831_v24  ;;  %v1318_v10 = vpack.c.bf16 %v798_v6, %v798_v6  ;;  %v1350_v11 = vpack.c.bf16 %v830_v7, %v830_v7  ;;  %v796_v12 = vsel %vm668_vm14, %v474_v56, %v732_v3  ;;  %v1912_v13 = vpop.f32.mrb[28].mxu0  ;;  %v1914_v14 = vpop.f32.mrb[28].mxu1 }
 0x116   :  { %vm700_vm15 = vcmp.ge.f32.partialorder %v602_v4, 0.0  ;;  %v1316_v15 = vpack.c.bf16 %v796_v12, %v796_v12  ;;  %v764_v16 = vmul.f32 0.1, %v602_v4  ;;  %vm671_vm0 = vcmp.ge.f32.partialorder %v485_v5, 0.0  ;;  %v1916_v18 = vpop.f32.mrb[29].mxu0  ;;  %v1934_v26 = vpop.f32.mrb[29].mxu1 }
 0x117   :  { %v735_v17 = vmul.f32 0.1, %v485_v5  ;;  %1119 = vst.msk [vmem:[%s2061_s3 + $0x58] sm:$0xf] %vm1096_vm1, %v1318_v10  ;;  %1151 = vst.msk [vmem:[%s2061_s3 + $0xd8] sm:$0xf] %vm1096_vm1, %v1350_v11  ;;  %v605_v23 = vadd.f32 %v1657_v34, %v1833_v25  ;;  %v498_v24 = vadd.f32 %v1859_v43, %v1657_v34  ;;  %v626_v39 = vadd.f32 %v1861_v44, %v1657_v34 }
 0x118   :  { %vm703_vm2 = vcmp.ge.f32.partialorder %v613_v8, 0.0  ;;  %v767_v19 = vmul.f32 0.1, %v613_v8  ;;  %vm669_vm3 = vcmp.ge.f32.partialorder %v477_v9, 0.0  ;;  %v733_v20 = vmul.f32 0.1, %v477_v9 }
 0x119   :  { %1117 = vst.msk [vmem:[%s2061_s3 + $0x50] sm:$0xf] %vm1096_vm1, %v1316_v15  ;;  %v828_v21 = vsel %vm700_vm15, %v602_v4, %v764_v16  ;;  %v799_v22 = vsel %vm671_vm0, %v485_v5, %v735_v17  ;;  %v1936_v27 = vpop.f32.mrb[30].mxu0  ;;  %v1938_v32 = vpop.f32.mrb[30].mxu1  ;;  %vm701_vm4 = vcmp.ge.f32.partialorder %v605_v23, 0.0  ;;  %vm674_vm5 = vcmp.ge.f32.partialorder %v498_v24, 0.0 }
 0x11a   :  { %v1348_v28 = vpack.c.bf16 %v828_v21, %v828_v21  ;;  %v1319_v29 = vpack.c.bf16 %v799_v22, %v799_v22  ;;  %v831_v30 = vsel %vm703_vm2, %v613_v8, %v767_v19  ;;  %v797_v31 = vsel %vm669_vm3, %v477_v9, %v733_v20  ;;  %v1940_v33 = vpop.f32.mrb[31].mxu0  ;;  %v1942_v25 = vpop.f32.mrb[31].mxu1 }
 0x11b   :  { %v1351_v35 = vpack.c.bf16 %v831_v30, %v831_v30  ;;  %v1317_v36 = vpack.c.bf16 %v797_v31, %v797_v31  ;;  %v765_v37 = vmul.f32 0.1, %v605_v23  ;;  %v738_v38 = vmul.f32 0.1, %v498_v24 }
 0x11c   :  { %1149 = vst.msk [vmem:[%s2061_s3 + $0xd0] sm:$0xf] %vm1096_vm1, %v1348_v28  ;;  %1120 = vst.msk [vmem:[%s2061_s3 + $0x5c] sm:$0xf] %vm1096_vm1, %v1319_v29  ;;  %v490_v40 = vadd.f32 %v1657_v34, %v1873_v51  ;;  %v618_v42 = vadd.f32 %v1657_v34, %v1875_v52  ;;  %v501_v43 = vadd.f32 %v1879_v57, %v1657_v34  ;;  %vm706_vm6 = vcmp.ge.f32.partialorder %v626_v39, 0.0 }
 0x11d   :  { %1152 = vst.msk [vmem:[%s2061_s3 + $0xdc] sm:$0xf] %vm1096_vm1, %v1351_v35  ;;  %1118 = vst.msk [vmem:[%s2061_s3 + $0x54] sm:$0xf] %vm1096_vm1, %v1317_v36  ;;  %v829_v41 = vsel %vm701_vm4, %v605_v23, %v765_v37  ;;  %v629_v44 = vadd.f32 %v1881_v58, %v1657_v34  ;;  %v802_v46 = vsel %vm674_vm5, %v498_v24, %v738_v38  ;;  %v770_v47 = vmul.f32 0.1, %v626_v39 }
 0x11e   :  { %v1349_v45 = vpack.c.bf16 %v829_v41, %v829_v41  ;;  %v1322_v48 = vpack.c.bf16 %v802_v46, %v802_v46  ;;  %vm672_vm7 = vcmp.ge.f32.partialorder %v490_v40, 0.0  ;;  %v736_v49 = vmul.f32 0.1, %v490_v40 }
 0x11f   :  { %vm704_vm8 = vcmp.ge.f32.partialorder %v618_v42, 0.0  ;;  %v834_v50 = vsel %vm706_vm6, %v626_v39, %v770_v47  ;;  %v768_v51 = vmul.f32 0.1, %v618_v42  ;;  %vm675_vm9 = vcmp.ge.f32.partialorder %v501_v43, 0.0 }
 0x120   :  { %1150 = vst.msk [vmem:[%s2061_s3 + $0xd4] sm:$0xf] %vm1096_vm1, %v1349_v45  ;;  %v739_v52 = vmul.f32 0.1, %v501_v43  ;;  %1123 = vst.msk [vmem:[%s2061_s3 + $0x68] sm:$0xf] %vm1096_vm1, %v1322_v48  ;;  %v1354_v53 = vpack.c.bf16 %v834_v50, %v834_v50  ;;  %v800_v54 = vsel %vm672_vm7, %v490_v40, %v736_v49  ;;  %v493_v59 = vadd.f32 %v1657_v34, %v1884_v62 }
 0x121   :  { %vm707_vm10 = vcmp.ge.f32.partialorder %v629_v44, 0.0  ;;  %v771_v55 = vmul.f32 0.1, %v629_v44  ;;  %v1320_v56 = vpack.c.bf16 %v800_v54, %v800_v54  ;;  %v832_v57 = vsel %vm704_vm8, %v618_v42, %v768_v51 }
 0x122   :  { %v803_v58 = vsel %vm675_vm9, %v501_v43, %v739_v52  ;;  %1155 = vst.msk [vmem:[%s2061_s3 + $0xe8] sm:$0xf] %vm1096_vm1, %v1354_v53  ;;  %v1352_v60 = vpack.c.bf16 %v832_v57, %v832_v57  ;;  %v621_v1 = vadd.f32 %v1657_v34, %v1886_v63  ;;  %vm673_vm11 = vcmp.ge.f32.partialorder %v493_v59, 0.0 }
 0x123   :  { %v1323_v61 = vpack.c.bf16 %v803_v58, %v803_v58  ;;  %v835_v0 = vsel %vm707_vm10, %v629_v44, %v771_v55  ;;  %1121 = vst.msk [vmem:[%s2061_s3 + $0x60] sm:$0xf] %vm1096_vm1, %v1320_v56  ;;  %v737_v3 = vmul.f32 0.1, %v493_v59  ;;  %v514_v62 = vadd.f32 %v1912_v13, %v1657_v34 }
 0x124   :  { %v1355_v2 = vpack.c.bf16 %v835_v0, %v835_v0  ;;  %1153 = vst.msk [vmem:[%s2061_s3 + $0xe0] sm:$0xf] %vm1096_vm1, %v1352_v60  ;;  %vm705_vm12 = vcmp.ge.f32.partialorder %v621_v1, 0.0  ;;  %v769_v63 = vmul.f32 0.1, %v621_v1  ;;  %v642_v4 = vadd.f32 %v1914_v14, %v1657_v34 }
 0x125   :  { %1124 = vst.msk [vmem:[%s2061_s3 + $0x6c] sm:$0xf] %vm1096_vm1, %v1323_v61  ;;  %v506_v5 = vadd.f32 %v1657_v34, %v1916_v18  ;;  %v801_v6 = vsel %vm673_vm11, %v493_v59, %v737_v3  ;;  %vm678_vm13 = vcmp.ge.f32.partialorder %v514_v62, 0.0  ;;  %v742_v7 = vmul.f32 0.1, %v514_v62 }
 0x126   :  { %1156 = vst.msk [vmem:[%s2061_s3 + $0xec] sm:$0xf] %vm1096_vm1, %v1355_v2  ;;  %v634_v8 = vadd.f32 %v1657_v34, %v1934_v26  ;;  %v1321_v9 = vpack.c.bf16 %v801_v6, %v801_v6  ;;  %v833_v10 = vsel %vm705_vm12, %v621_v1, %v769_v63  ;;  %vm710_vm14 = vcmp.ge.f32.partialorder %v642_v4, 0.0 }
 0x127   :  { %v774_v11 = vmul.f32 0.1, %v642_v4  ;;  %v1353_v12 = vpack.c.bf16 %v833_v10, %v833_v10  ;;  %v806_v13 = vsel %vm678_vm13, %v514_v62, %v742_v7  ;;  %vm676_vm15 = vcmp.ge.f32.partialorder %v506_v5, 0.0 }
 0x128   :  { %v740_v14 = vmul.f32 0.1, %v506_v5  ;;  %1122 = vst.msk [vmem:[%s2061_s3 + $0x64] sm:$0xf] %vm1096_vm1, %v1321_v9  ;;  %v1326_v15 = vpack.c.bf16 %v806_v13, %v806_v13  ;;  %vm708_vm0 = vcmp.ge.f32.partialorder %v634_v8, 0.0  ;;  %v517_v20 = vadd.f32 %v1936_v27, %v1657_v34 }
 0x129   :  { %v838_v16 = vsel %vm710_vm14, %v642_v4, %v774_v11  ;;  %v772_v17 = vmul.f32 0.1, %v634_v8  ;;  %1154 = vst.msk [vmem:[%s2061_s3 + $0xe4] sm:$0xf] %vm1096_vm1, %v1353_v12  ;;  %v645_v21 = vadd.f32 %v1938_v32, %v1657_v34  ;;  %v509_v24 = vadd.f32 %v1657_v34, %v1940_v33 }
 0x12a   :  { %v1358_v18 = vpack.c.bf16 %v838_v16, %v838_v16  ;;  %v804_v19 = vsel %vm676_vm15, %v506_v5, %v740_v14  ;;  %1127 = vst.msk [vmem:[%s2061_s3 + $0x78] sm:$0xf] %vm1096_vm1, %v1326_v15  ;;  %v637_v26 = vadd.f32 %v1657_v34, %v1942_v25  ;;  %vm679_vm2 = vcmp.ge.f32.partialorder %v517_v20, 0.0 }
 0x12b   :  { %v1324_v22 = vpack.c.bf16 %v804_v19, %v804_v19  ;;  %v836_v23 = vsel %vm708_vm0, %v634_v8, %v772_v17  ;;  %v743_v28 = vmul.f32 0.1, %v517_v20  ;;  %vm711_vm3 = vcmp.ge.f32.partialorder %v645_v21, 0.0 }
 0x12c   :  { %1159 = vst.msk [vmem:[%s2061_s3 + $0xf8] sm:$0xf] %vm1096_vm1, %v1358_v18  ;;  %v1356_v27 = vpack.c.bf16 %v836_v23, %v836_v23  ;;  %v775_v29 = vmul.f32 0.1, %v645_v21  ;;  %vm677_vm4 = vcmp.ge.f32.partialorder %v509_v24, 0.0  ;;  %vm709_vm5 = vcmp.ge.f32.partialorder %v637_v26, 0.0 }
 0x12d   :  { %1125 = vst.msk [vmem:[%s2061_s3 + $0x70] sm:$0xf] %vm1096_vm1, %v1324_v22  ;;  %v741_v30 = vmul.f32 0.1, %v509_v24  ;;  %v807_v34 = vsel %vm679_vm2, %v517_v20, %v743_v28  ;;  %v773_v31 = vmul.f32 0.1, %v637_v26 }
 0x12e   :  { %1157 = vst.msk [vmem:[%s2061_s3 + $0xf0] sm:$0xf] %vm1096_vm1, %v1356_v27  ;;  %v1327_v32 = vpack.c.bf16 %v807_v34, %v807_v34  ;;  %v839_v33 = vsel %vm711_vm3, %v645_v21, %v775_v29 }
 0x12f   :  { %v805_v35 = vsel %vm677_vm4, %v509_v24, %v741_v30  ;;  %v1359_v36 = vpack.c.bf16 %v839_v33, %v839_v33  ;;  %v837_v25 = vsel %vm709_vm5, %v637_v26, %v773_v31 }
 0x130   :  { %v1325_v37 = vpack.c.bf16 %v805_v35, %v805_v35  ;;  %1128 = vst.msk [vmem:[%s2061_s3 + $0x7c] sm:$0xf] %vm1096_vm1, %v1327_v32  ;;  %v1357_v38 = vpack.c.bf16 %v837_v25, %v837_v25 }
 0x131   :  { %1160 = vst.msk [vmem:[%s2061_s3 + $0xfc] sm:$0xf] %vm1096_vm1, %v1359_v36 }
 0x132   :  { %1126 = vst.msk [vmem:[%s2061_s3 + $0x74] sm:$0xf] %vm1096_vm1, %v1325_v37  ;;  %1158 = vst.msk [vmem:[%s2061_s3 + $0xf4] sm:$0xf] %vm1096_vm1, %v1357_v38 }

</bundles_post_ra>
